<compile_context>
chip_gen: v7x
topology: tpu7x:2x2x1
jax: 0.10.0
libtpu: 0.0.40
codegen_flags: <defaults>
</compile_context>

<pallas_src>
import jax
import jax.numpy as jnp
from jax.experimental import pallas as pl
from jax.experimental.pallas import tpu as pltpu


def _make_ce_kernel(n_rows: int, n_classes: int):
    """Builds the kernel closure over the static row/class counts."""

    def kernel(logits_ref, labels_ref, partial_ref, m_sc, l_sc, t_sc):
        i = pl.program_id(0)            # row-tile index   ("parallel")
        j = pl.program_id(1)            # class-tile index ("arbitrary" reduction)
        n_ctiles = pl.num_programs(1)

        @pl.when(j == 0)
        def _():
            m_sc[...] = jnp.full_like(m_sc, -jnp.inf)
            l_sc[...] = jnp.zeros_like(l_sc)
            t_sc[...] = jnp.zeros_like(t_sc)

        # cast in-kernel (free VPU filler) so the HBM read stays in input dtype
        logits = logits_ref[...].astype(jnp.float32)       # (TN, TC)
        labels = labels_ref[...]                           # (TN, 1) int32
        tn, tc = logits.shape

        # mask class columns that fall past the real class count
        # (ragged last class tile / lane padding)
        col = jax.lax.broadcasted_iota(jnp.int32, (tn, tc), 1) + j * tc
        class_valid = col < n_classes
        x = jnp.where(class_valid, logits, -jnp.inf)

        # streaming logsumexp across class tiles
        m_prev = m_sc[...]                                  # (TN, 1)
        m_new = jnp.maximum(m_prev, jnp.max(x, axis=-1, keepdims=True))
        alpha = jnp.exp(m_prev - m_new)
        p = jnp.exp(x - m_new)                              # (TN, TC)
        l_sc[...] = alpha * l_sc[...] + jnp.sum(p, axis=-1, keepdims=True)
        m_sc[...] = m_new

        # accumulate the raw target logit via a one-hot mask (no dyn. gather on TPU)
        onehot = (col == labels) & class_valid
        t_sc[...] = t_sc[...] + jnp.sum(
            jnp.where(onehot, x, 0.0), axis=-1, keepdims=True)

        @pl.when(j == n_ctiles - 1)
        def _():
            lse = m_sc[...] + jnp.log(l_sc[...])            # (TN, 1)
            # mask rows beyond the real batch (ragged last row tile)
            row = jax.lax.broadcasted_iota(jnp.int32, (tn, 1), 0) + i * tn
            nll = jnp.where(row < n_rows, lse - t_sc[...], 0.0)
            part = jnp.sum(nll, axis=0, keepdims=True)      # (1, 1) f32
            # lane-dense (unmasked) store of the per-tile partial sum
            partial_ref[...] = jnp.broadcast_to(part, partial_ref.shape)

    return kernel


def cross_entropy_loss(logits: jax.Array,
                       labels: jax.Array,
                       *,
                       target_tile_bytes: int = 4 << 20,
                       max_class_tile: int = 4096) -> jax.Array:
    """Equivalent of F.cross_entropy(logits, labels) with 'mean' reduction."""
    n, c = logits.shape
    labels2d = labels.astype(jnp.int32).reshape(n, 1)
    itemsize = jnp.dtype(logits.dtype).itemsize

    # ---- class (lane) tiling: full C if it is small, else a multiple of 128 ----
    max_class_tile = max(128, (max_class_tile // 128) * 128)
    tc = c if c <= max_class_tile else max_class_tile
    num_c_tiles = pl.cdiv(c, tc)

    # ---- row (sublane) tiling: ~target_tile_bytes per logits buffer ----
    rows_for_target = max(8, target_tile_bytes // max(1, tc * itemsize))
    tn = min(n, rows_for_target)
    if tn < n:
        tn = max(8, (tn // 8) * 8)       # keep the sublane dim a multiple of 8
    num_r_tiles = pl.cdiv(n, tn)

    kernel = _make_ce_kernel(n, c)

    partials = pl.pallas_call(
        kernel,
        out_shape=jax.ShapeDtypeStruct((num_r_tiles, 128), jnp.float32),
        grid_spec=pltpu.PrefetchScalarGridSpec(
            num_scalar_prefetch=0,
            grid=(num_r_tiles, num_c_tiles),
            in_specs=[
                pl.BlockSpec((tn, tc), lambda i, j: (i, j)),   # logits tile
                pl.BlockSpec((tn, 1), lambda i, j: (i, 0)),    # labels tile
            ],
            out_specs=pl.BlockSpec((1, 128), lambda i, j: (i, 0)),
            scratch_shapes=[
                pltpu.VMEM((tn, 1), jnp.float32),   # running max m
                pltpu.VMEM((tn, 1), jnp.float32),   # running sum l
                pltpu.VMEM((tn, 1), jnp.float32),   # target logit accumulator
            ],
        ),
        compiler_params=pltpu.CompilerParams(
            dimension_semantics=("parallel", "arbitrary"),
        ),
    )(logits, labels2d)

    # tiny final reduction (f32) in plain JAX
    return jnp.sum(partials[:, 0]) / jnp.float32(n)


def _reference_ce(logits_f32: jax.Array, labels: jax.Array) -> jax.Array:
    return jnp.mean(
        jax.nn.logsumexp(logits_f32, axis=-1)
        - jnp.take_along_axis(logits_f32, labels[:, None], axis=-1)[:, 0]
    )


if __name__ == "__main__":
    key = jax.random.PRNGKey(0)
    k1, k2, k3, k4 = jax.random.split(key, 4)

    # Case 1: toy shapes from the original module usage (batch=8, classes=32, f32).
    N, C = 8, 32
    logits = jax.random.normal(k1, (N, C), dtype=jnp.float32)
    labels = jax.random.randint(k2, (N,), 0, C, dtype=jnp.int32)
    loss = cross_entropy_loss(logits, labels)
    jax.block_until_ready(loss)
    ref = _reference_ce(logits, labels)
    assert jnp.allclose(loss, ref, atol=1e-5, rtol=1e-5), (loss, ref)

    # Case 2: bf16 ingestion + ragged row tiles (N % TN != 0) + ragged class tiles
    # (C % TC != 0) using tiny tiles to exercise the 2-D grid paths.
    N2, C2 = 50, 200
    logits2 = jax.random.normal(k3, (N2, C2), dtype=jnp.float32)
    labels2 = jax.random.randint(k4, (N2,), 0, C2, dtype=jnp.int32)
    logits2_bf16 = logits2.astype(jnp.bfloat16)
    loss2 = cross_entropy_loss(
        logits2_bf16, labels2,
        target_tile_bytes=16 * 128 * 2,   # -> TN=16 -> 4 row tiles (last one ragged)
        max_class_tile=128,               # -> TC=128 -> 2 class tiles (last one ragged)
    )
    jax.block_until_ready(loss2)
    ref2 = _reference_ce(logits2_bf16.astype(jnp.float32), labels2)
    assert jnp.allclose(loss2, ref2, atol=1e-4, rtol=1e-4), (loss2, ref2)

    print("KERNEL_OK")
</pallas_src>

<mosaic_0001>
module attributes {stable_mosaic.version = 11 : i64} {
  func.func @kernel(%arg0: i32, %arg1: i32, %arg2: memref<8x32xf32, #tpu.memory_space<vmem>>, %arg3: memref<8x1xi32, #tpu.memory_space<vmem>>, %arg4: memref<1x128xf32, #tpu.memory_space<vmem>>, %arg5: memref<8x1xf32, #tpu.memory_space<vmem>>, %arg6: memref<8x1xf32, #tpu.memory_space<vmem>>, %arg7: memref<8x1xf32, #tpu.memory_space<vmem>>) attributes {dimension_semantics = [#tpu.dimension_semantics<parallel>, #tpu.dimension_semantics<arbitrary>], iteration_bounds = array<i64: 1, 1>, scalar_prefetch = 0 : i64, scratch_operands = 3 : i64, tpu.core_type = #tpu.core_type<tc>, window_params = [{transform_indices = @transform_0, window_bounds = array<i64: 8, 32>}, {transform_indices = @transform_1, window_bounds = array<i64: 8, 1>}, {transform_indices = @transform_2, window_bounds = array<i64: 1, 128>}]} {
    %c0_i32 = arith.constant 0 : i32
    %0 = arith.cmpi eq, %arg1, %c0_i32 : i32
    %1 = arith.extui %0 : i1 to i32
    %c0_i32_0 = arith.constant 0 : i32
    %2 = arith.cmpi ne, %1, %c0_i32_0 : i32
    scf.if %2 {
      %cst_23 = arith.constant 0xFF800000 : f32
      %42 = vector.broadcast %cst_23 : f32 to vector<8x1xf32>
      %c0_24 = arith.constant 0 : index
      %c0_25 = arith.constant 0 : index
      %43 = vector.load %arg5[%c0_24, %c0_25] : memref<8x1xf32, #tpu.memory_space<vmem>>, vector<8x1xf32>
      tpu.vector_store %arg5[%c0_24, %c0_25], %42 {strides = array<i32>} : memref<8x1xf32, #tpu.memory_space<vmem>>, vector<8x1xf32>,
      %cst_26 = arith.constant 0.000000e+00 : f32
      %44 = vector.broadcast %cst_26 : f32 to vector<8x1xf32>
      %c0_27 = arith.constant 0 : index
      %c0_28 = arith.constant 0 : index
      %45 = vector.load %arg6[%c0_27, %c0_28] : memref<8x1xf32, #tpu.memory_space<vmem>>, vector<8x1xf32>
      tpu.vector_store %arg6[%c0_27, %c0_28], %44 {strides = array<i32>} : memref<8x1xf32, #tpu.memory_space<vmem>>, vector<8x1xf32>,
      %cst_29 = arith.constant 0.000000e+00 : f32
      %46 = vector.broadcast %cst_29 : f32 to vector<8x1xf32>
      %c0_30 = arith.constant 0 : index
      %c0_31 = arith.constant 0 : index
      %47 = vector.load %arg7[%c0_30, %c0_31] : memref<8x1xf32, #tpu.memory_space<vmem>>, vector<8x1xf32>
      tpu.vector_store %arg7[%c0_30, %c0_31], %46 {strides = array<i32>} : memref<8x1xf32, #tpu.memory_space<vmem>>, vector<8x1xf32>,
    } else {
    }
    %c0 = arith.constant 0 : index
    %c0_1 = arith.constant 0 : index
    %3 = vector.load %arg2[%c0, %c0_1] : memref<8x32xf32, #tpu.memory_space<vmem>>, vector<8x32xf32>
    %c0_2 = arith.constant 0 : index
    %c0_3 = arith.constant 0 : index
    %4 = vector.load %arg3[%c0_2, %c0_3] : memref<8x1xi32, #tpu.memory_space<vmem>>, vector<8x1xi32>
    %5 = tpu.iota {dimensions = array<i32: 1>} : vector<8x32xi32>
    %c32_i32 = arith.constant 32 : i32
    %6 = arith.muli %arg1, %c32_i32 : i32
    %7 = vector.broadcast %6 : i32 to vector<8x32xi32>
    %8 = arith.addi %5, %7 : vector<8x32xi32>
    %c32_i32_4 = arith.constant 32 : i32
    %9 = vector.broadcast %c32_i32_4 : i32 to vector<8x32xi32>
    %10 = arith.cmpi slt, %8, %9 : vector<8x32xi32>
    %cst = arith.constant 0xFF800000 : f32
    %11 = vector.broadcast %cst : f32 to vector<8x32xf32>
    %12 = arith.select %10, %3, %11 : vector<8x32xi1>, vector<8x32xf32>
    %c0_5 = arith.constant 0 : index
    %c0_6 = arith.constant 0 : index
    %13 = vector.load %arg5[%c0_5, %c0_6] : memref<8x1xf32, #tpu.memory_space<vmem>>, vector<8x1xf32>
    %cst_7 = arith.constant dense<0xFF800000> : vector<8xf32>
    %14 = vector.multi_reduction <maximumf>, %12, %cst_7 [1] : vector<8x32xf32> to vector<8xf32>
    %15 = vector.shape_cast %14 : vector<8xf32> to vector<8x1xf32>
    %16 = arith.maximumf %13, %15 : vector<8x1xf32>
    %17 = arith.subf %13, %16 : vector<8x1xf32>
    %18 = math.exp %17 : vector<8x1xf32>
    %19 = vector.broadcast %16 : vector<8x1xf32> to vector<8x32xf32>
    %20 = arith.subf %12, %19 : vector<8x32xf32>
    %21 = math.exp %20 : vector<8x32xf32>
    %c0_8 = arith.constant 0 : index
    %c0_9 = arith.constant 0 : index
    %22 = vector.load %arg6[%c0_8, %c0_9] : memref<8x1xf32, #tpu.memory_space<vmem>>, vector<8x1xf32>
    %23 = arith.mulf %18, %22 : vector<8x1xf32>
    %cst_10 = arith.constant dense<0.000000e+00> : vector<8xf32>
    %24 = vector.multi_reduction <add>, %21, %cst_10 [1] : vector<8x32xf32> to vector<8xf32>
    %25 = vector.shape_cast %24 : vector<8xf32> to vector<8x1xf32>
    %26 = arith.addf %23, %25 : vector<8x1xf32>
    %c0_11 = arith.constant 0 : index
    %c0_12 = arith.constant 0 : index
    %27 = vector.load %arg6[%c0_11, %c0_12] : memref<8x1xf32, #tpu.memory_space<vmem>>, vector<8x1xf32>
    tpu.vector_store %arg6[%c0_11, %c0_12], %26 {strides = array<i32>} : memref<8x1xf32, #tpu.memory_space<vmem>>, vector<8x1xf32>,
    %c0_13 = arith.constant 0 : index
    %c0_14 = arith.constant 0 : index
    %28 = vector.load %arg5[%c0_13, %c0_14] : memref<8x1xf32, #tpu.memory_space<vmem>>, vector<8x1xf32>
    tpu.vector_store %arg5[%c0_13, %c0_14], %16 {strides = array<i32>} : memref<8x1xf32, #tpu.memory_space<vmem>>, vector<8x1xf32>,
    %29 = vector.broadcast %4 : vector<8x1xi32> to vector<8x32xi32>
    %30 = arith.cmpi eq, %8, %29 : vector<8x32xi32>
    %31 = arith.andi %30, %10 : vector<8x32xi1>
    %c0_15 = arith.constant 0 : index
    %c0_16 = arith.constant 0 : index
    %32 = vector.load %arg7[%c0_15, %c0_16] : memref<8x1xf32, #tpu.memory_space<vmem>>, vector<8x1xf32>
    %cst_17 = arith.constant 0.000000e+00 : f32
    %33 = vector.broadcast %cst_17 : f32 to vector<8x32xf32>
    %34 = arith.select %31, %12, %33 : vector<8x32xi1>, vector<8x32xf32>
    %cst_18 = arith.constant dense<0.000000e+00> : vector<8xf32>
    %35 = vector.multi_reduction <add>, %34, %cst_18 [1] : vector<8x32xf32> to vector<8xf32>
    %36 = vector.shape_cast %35 : vector<8xf32> to vector<8x1xf32>
    %37 = arith.addf %32, %36 : vector<8x1xf32>
    %c0_19 = arith.constant 0 : index
    %c0_20 = arith.constant 0 : index
    %38 = vector.load %arg7[%c0_19, %c0_20] : memref<8x1xf32, #tpu.memory_space<vmem>>, vector<8x1xf32>
    tpu.vector_store %arg7[%c0_19, %c0_20], %37 {strides = array<i32>} : memref<8x1xf32, #tpu.memory_space<vmem>>, vector<8x1xf32>,
    %c0_i32_21 = arith.constant 0 : i32
    %39 = arith.cmpi eq, %arg1, %c0_i32_21 : i32
    %40 = arith.extui %39 : i1 to i32
    %c0_i32_22 = arith.constant 0 : i32
    %41 = arith.cmpi ne, %40, %c0_i32_22 : i32
    scf.if %41 {
      %c0_23 = arith.constant 0 : index
      %c0_24 = arith.constant 0 : index
      %42 = vector.load %arg5[%c0_23, %c0_24] : memref<8x1xf32, #tpu.memory_space<vmem>>, vector<8x1xf32>
      %c0_25 = arith.constant 0 : index
      %c0_26 = arith.constant 0 : index
      %43 = vector.load %arg6[%c0_25, %c0_26] : memref<8x1xf32, #tpu.memory_space<vmem>>, vector<8x1xf32>
      %44 = math.log %43 : vector<8x1xf32>
      %45 = arith.addf %42, %44 : vector<8x1xf32>
      %46 = tpu.iota {dimensions = array<i32: 0>} : vector<8x1xi32>
      %c8_i32 = arith.constant 8 : i32
      %47 = arith.muli %arg0, %c8_i32 : i32
      %48 = vector.broadcast %47 : i32 to vector<8x1xi32>
      %49 = arith.addi %46, %48 : vector<8x1xi32>
      %c8_i32_27 = arith.constant 8 : i32
      %50 = vector.broadcast %c8_i32_27 : i32 to vector<8x1xi32>
      %51 = arith.cmpi slt, %49, %50 : vector<8x1xi32>
      %c0_28 = arith.constant 0 : index
      %c0_29 = arith.constant 0 : index
      %52 = vector.load %arg7[%c0_28, %c0_29] : memref<8x1xf32, #tpu.memory_space<vmem>>, vector<8x1xf32>
      %53 = arith.subf %45, %52 : vector<8x1xf32>
      %cst_30 = arith.constant 0.000000e+00 : f32
      %54 = vector.broadcast %cst_30 : f32 to vector<8x1xf32>
      %55 = arith.select %51, %53, %54 : vector<8x1xi1>, vector<8x1xf32>
      %cst_31 = arith.constant dense<0.000000e+00> : vector<1xf32>
      %56 = vector.multi_reduction <add>, %55, %cst_31 [0] : vector<8x1xf32> to vector<1xf32>
      %57 = vector.shape_cast %56 : vector<1xf32> to vector<1x1xf32>
      %58 = vector.shape_cast %57 : vector<1x1xf32> to vector<1x1xf32>
      %59 = vector.broadcast %58 : vector<1x1xf32> to vector<1x128xf32>
      %c0_32 = arith.constant 0 : index
      %c0_33 = arith.constant 0 : index
      %60 = vector.load %arg4[%c0_32, %c0_33] : memref<1x128xf32, #tpu.memory_space<vmem>>, vector<1x128xf32>
      tpu.vector_store %arg4[%c0_32, %c0_33], %59 {strides = array<i32>} : memref<1x128xf32, #tpu.memory_space<vmem>>, vector<1x128xf32>,
    } else {
    }
    return
  }
  func.func @transform_0(%arg0: i32, %arg1: i32) -> (i32, i32) {
    %c0_i32 = arith.constant 0 : i32
    return %arg0, %arg1 : i32, i32
  }
  func.func @transform_1(%arg0: i32, %arg1: i32) -> (i32, i32) {
    %c0_i32 = arith.constant 0 : i32
    %c0_i32_0 = arith.constant 0 : i32
    return %arg0, %c0_i32 : i32, i32
  }
  func.func @transform_2(%arg0: i32, %arg1: i32) -> (i32, i32) {
    %c0_i32 = arith.constant 0 : i32
    %c0_i32_0 = arith.constant 0 : i32
    return %arg0, %c0_i32 : i32, i32
  }
}

</mosaic_0001>

<bundles_post_ra>
// kernel: tpu_custom_call.1
= control target key start
LH: loop header
LB: loop body
LE: loop exit
PB: predicated region body
PF: predicated region fallthrough
CT: control target
= control target key end

     0   :  { %v22_v0 = vlaneseq  ;;  %s196_s0 = inlined_call_operand.vmem [shape: f32[8,32], index: 0, kind: input, shape index: {}]   ;;  %s197_s1 = inlined_call_operand.vmem [shape: s32[8,1], index: 1, kind: input, shape index: {}]   ;;  %s198_s2 = inlined_call_operand.hbm [shape: f32[1,128], index: 2, kind: output, shape index: {}]  }
   0x1   :  { %7 = vsyncpa [#allocation6], 0  ;;  %v20_v1 = vld [vmem:[%s196_s0] sm:$0xff]  ;;  %vm30_vm0 = vcmask 261120   ;;  %vm16_vm2 = vcmask 7168   ;;  %v147_v5 = vmov -inf  }
   0x2   :  { %v23_v2 = vand.u32 127, %v22_v0  ;;  %17 = vst.msk [vmem:[#allocation2] sm:$0xff] %vm16_vm2, %v147_v5  ;;  %v148_v6 = vmov 0   ;;  %v21_v7 = vld [vmem:[%s197_s1] sm:$0xff]  ;;  %v149_v8 = vmov 0.0   ;;  %s150_s0 = smov [#allocation5]  }
   0x3   :  { %115 = vset.pattern.permute.xlu0 %v148_v6  ;;  %116 = vset.pattern.permute.xlu1 %v148_v6  ;;  %18 = vst.msk [vmem:[#allocation3] sm:$0xff] %vm16_vm2, %v149_v8  ;;  %19 = vst.msk [vmem:[#allocation4] sm:$0xff] %vm16_vm2, %v149_v8  ;;  %s103_s1 = sshll.u32 %s150_s0, 4  ;;  %s104_s1 = int_to_ptr.vmem [resolvable:$true] %s103_s1 }
   0x4   :  { %vm27_vm1 = vcmp.lt.s32.totalorder %v23_v2, 32  ;;  %56 = vperm.xlu1 %116, %v21_v7   ;;  %s123_s13 = scalar_lea.vmem %s104_s1, 16  ;;  %s127_s14 = scalar_lea.vmem %s104_s1, 32 }
   0x5   :  { %v28_v3 = vsel %vm27_vm1, %v20_v1, -inf  ;;  %p124_p0 = scmp.ne.s32.totalorder %s104_s1, %s123_s13  ;;  %p128_p1 = scmp.lt.s32.totalorder %s104_s1, %s104_s1 }
   0x6   :  { %v31_v4 = vsel %vm30_vm0, %v28_v3, -inf  ;;  %p129_p2 = scmp.lt.s32.totalorder %s127_s14, %s123_s13 }
   0x7   :  { %32 = vmax.xlane.f32.xlu0 %v31_v4 }
   0x8   :  { %p130_p3 = por %p129_p2, %p128_p1 }
   0x9   :  { %v29_v9 = vld [vmem:[#allocation2] sm:$0xff] }
   0xa   :  { %v46_v23 = vld [vmem:[#allocation3] sm:$0xff]  ;;  %v60_v27 = vld [vmem:[#allocation4] sm:$0xff]  ;;  %p131_p4 = pnand %p130_p3, %p124_p0 }
  0x83   :  { %v57_v16 = vpop.permute.xlu1 %56 }
  0x84   :  { %vm58_vm3 = vcmp.eq.s32.totalorder %v23_v2, %v57_v16 }
  0x85   :  { %vm59_vm4 = vmand %vm58_vm3, %vm27_vm1 }
  0x86   :  { %v61_v18 = vsel %vm59_vm4, %v28_v3, 0.0 }
  0x87   :  { %v62_v20 = vsel %vm30_vm0, %v61_v18, 0.0 }
  0x94   :  { %v33_v10 = vpop.xlane.xlu0 %32 }
  0x95   :  { %v34_v11 = vmax.f32 %v29_v9, %v33_v10 }
  0x97   :  { %v35_v12 = vsub.f32 %v29_v9, %v34_v11  ;;  %54 = vst.msk [vmem:[#allocation2] sm:$0xff] %vm16_vm2, %v34_v11  ;;  %40 = vperm.xlu0 %115, %v34_v11  }
  0x99   :  { %v36_v21 = vmul.f32 1.442695, %v35_v12 }
  0x9e   :  { %v70_v33 = vld [vmem:[#allocation2] sm:$0xff] }
 0x116   :  { %v41_v13 = vpop.permute.xlu0 %40 }
 0x117   :  { %v43_v14 = vsub.f32 %v28_v3, %v41_v13 }
 0x119   :  { %v44_v15 = vmul.f32 1.442695, %v43_v14 }
 0x11b   :  { %117 = vpow2.f32 %v44_v15 }
 0x11c   :  { %119 = vpow2.f32 %v36_v21 }
 0x125   :  { %v118_v17 = vpop.eup %117 }
 0x126   :  { %v48_v19 = vsel %vm30_vm0, %v118_v17, 0.0  ;;  %v120_v22 = vpop.eup %119 }
 0x127   :  { %49 = vadd.xlane.f32.xlu1 %v48_v19  ;;  %v47_v24 = vmul.f32 %v120_v22, %v46_v23 }
 0x12b   :  { %63 = vadd.xlane.f32.xlu1 %v62_v20 }
 0x1b4   :  { %v50_v25 = vpop.xlane.xlu1 %49 }
 0x1b5   :  { %v51_v26 = vadd.f32 %v50_v25, %v47_v24 }
 0x1b7   :  { %53 = vst.msk [vmem:[#allocation3] sm:$0xff] %vm16_vm2, %v51_v26 }
 0x1b8   :  { %v64_v28 = vpop.xlane.xlu1 %63 }
 0x1b9   :  { %v65_v29 = vadd.f32 %v64_v28, %v60_v27 }
 0x1bb   :  { %66 = vst.msk [vmem:[#allocation4] sm:$0xff] %vm16_vm2, %v65_v29 }
 0x1be   :  { %v71_v30 = vld [vmem:[#allocation3] sm:$0xff] }
 0x1bf   :  { %121 = vlog2.f32 %v71_v30 }
 0x1c2   :  { %v81_v34 = vld [vmem:[#allocation4] sm:$0xff] }
 0x1c9   :  { %v122_v31 = vpop.eup %121 }
 0x1ca   :  { %v73_v32 = vmul.f32 0.6931472, %v122_v31 }
 0x1cc   :  { %v74_v35 = vadd.f32 %v73_v32, %v70_v33 }
 0x1ce   :  { %v82_v36 = vsub.f32 %v74_v35, %v81_v34 }
 0x1d0   :  { %v84_v37 = vsel %vm16_vm2, %v82_v36, 0.0 }
 0x1d1   :  { %v85_v38 = vrot.slane %v84_v37, 4 }
 0x1d3   :  { %v86_v39 = vadd.f32 %v85_v38, %v84_v37 }
 0x1d5   :  { %v87_v40 = vrot.slane %v86_v39, 2 }
 0x1d7   :  { %v88_v41 = vadd.f32 %v87_v40, %v86_v39 }
 0x1d9   :  { %v89_v42 = vrot.slane %v88_v41, 1 }
 0x1db   :  { %v90_v43 = vadd.f32 %v89_v42, %v88_v41 }
 0x1dd   :  { %93 = vperm.xlu1 %116, %v90_v43  }
 0x25c   :  { %v94_v44 = vpop.permute.xlu1 %93 }
 0x25d   :  { %96 = vst [vmem:[#allocation5] sm:$0x1] %v94_v44 }
 0x25e   :  { %134 = shalt.err (!%p131_p4)
}
 0x25f   :  { %s135_s17 = scalar_lea.hbm %s198_s2, 16 }
 0x260   :  { %p136_p5 = scmp.ne.s32.totalorder %s198_s2, %s135_s17  ;;  %p139_p6 = scmp.lt.u32.totalorder %s135_s17, %s198_s2 }
 0x262   :  { %p141_p7 = pnand %p139_p6, %p136_p5 }
 0x264   :  { %144 = shalt.err (!%p141_p7)
}
 0x265   :  { %106 = dma.vmem_to_hbm [thread:$0]  %s104_s1, 16, %s198_s2, [#allocation6]  }
 0x266   :  { %145 = dma.done.wait [#allocation6], 16  }
 0x267   :  { %146 = vsyncadd [#allocation6], 4294967280 }
 0x268   :  { %110 = vsyncpa [#allocation6], 1 }

</bundles_post_ra>
